<compile_context>
chip_gen: v7x
topology: tpu7x:2x2x1
jax: 0.10.0
libtpu: 0.0.40
codegen_flags: <defaults>
</compile_context>

<pallas_src>
import jax
import jax.numpy as jnp
import numpy as np
from jax.experimental import pallas as pl
from jax.experimental.pallas import tpu as pltpu


# ----------------------------- config (static) ------------------------------
NUM_CONT_VARS = 4          # num_cont_vars
NUM_CATE_VARS = 2          # num_cate_vars
MAX_SIZE_RATIO = 8         # max_size_ratio
EMBEDDING_SIZE = 28        # embedding_size
HIDDEN_LAYERS = 2          # hidden_layers (>= 1)

CATE_IN = NUM_CATE_VARS * MAX_SIZE_RATIO            # encoder input width (16)
NUM_FEAT = NUM_CONT_VARS + EMBEDDING_SIZE           # cost layer width    (32)
IN_DIM = NUM_CONT_VARS + CATE_IN                    # model input width   (20)
IN_PAD = 32                                         # K padded to sublane-aligned
SLAB_W = 2 * NUM_FEAT                               # 64: [We | Wa] fused columns

BATCH = 256
TILE_B = BATCH // 2        # grid=(2,): both TCs on v7x, near-minimal steps elsewhere
ALIGN = 16                 # bf16 packs 16 sublanes per vreg


# ------------------- packed-parameter slab layout (static) ------------------
def _build_offsets():
    offs, cur = {}, 0

    def add(name, rows):
        nonlocal cur
        offs[name] = cur
        cur = -(-(cur + rows) // ALIGN) * ALIGN     # keep sections 16-row aligned

    add("wx", IN_PAD)        # fused x-side weight [We_pad | Wa_folded]  [32, 64]
    add("be", 1)             # encoder bias, zero-padded to 32 lanes     [ 1, 32]
    add("wb", NUM_FEAT)      # embedding rows of folded W1               [32, 32]
    add("b1", 1)             # folded first-layer bias                   [ 1, 32]
    for i in range(1, HIDDEN_LAYERS):
        add(f"w{i + 1}", NUM_FEAT)
        add(f"b{i + 1}", 1)
    add("wf", 1)             # final weight as a row vector              [ 1, 32]
    return offs, cur


_OFFS, P_ROWS = _build_offsets()


# ------------------------------ Pallas kernel -------------------------------
def _kcost_kernel(x_ref, p_ref, bf_ref, out_ref):
    def prow(name, rows, width=NUM_FEAT):
        return p_ref[pl.ds(_OFFS[name], rows), :width]

    x = x_ref[...]                                            # bf16 [TB, 32]

    # fused encoder + folded-normalize cont matmul: one [TB,32]@[32,64] MXU op
    y = jnp.dot(x, prow("wx", IN_PAD, SLAB_W),
                preferred_element_type=jnp.float32)           # f32  [TB, 64]
    enc = jnp.maximum(y[:, :NUM_FEAT] + prow("be", 1), 0.0)   # f32  [TB, 32]
    cont = y[:, NUM_FEAT:]                                    # f32  [TB, 32]

    # first cost layer (Normalize + concat folded into wx / wb / b1)
    h = jnp.maximum(
        jnp.dot(enc.astype(jnp.bfloat16), prow("wb", NUM_FEAT),
                preferred_element_type=jnp.float32)
        + cont + prow("b1", 1), 0.0)                          # f32  [TB, 32]

    # remaining hidden layers
    for i in range(1, HIDDEN_LAYERS):
        h = jnp.maximum(
            jnp.dot(h.astype(jnp.bfloat16), prow(f"w{i + 1}", NUM_FEAT),
                    preferred_element_type=jnp.float32)
            + prow(f"b{i + 1}", 1), 0.0)

    # final Linear(32, 1) + ReLU: VPU multiply + XLU lane reduction,
    # bias added once AFTER the reduction (SMEM scalar).
    wf = prow("wf", 1)                                        # bf16 [1, 32]
    out = jnp.maximum(jnp.sum(h * wf, axis=-1) + bf_ref[0], 0.0)   # f32 [TB]
    out_ref[...] = out.reshape(1, -1)                         # lane-dense store


def kcost_forward(x_pad, param_slab, final_bias, *, tile_b=TILE_B):
    b = x_pad.shape[0]
    # TODO(synk): ragged batches need host-side padding; b must divide by tile_b.
    assert b % tile_b == 0 and tile_b % 128 == 0, (b, tile_b)
    out = pl.pallas_call(
        _kcost_kernel,
        out_shape=jax.ShapeDtypeStruct((1, b), jnp.float32),
        grid_spec=pltpu.PrefetchScalarGridSpec(
            num_scalar_prefetch=0,
            grid=(b // tile_b,),
            in_specs=[
                pl.BlockSpec((tile_b, IN_PAD), lambda i: (i, 0)),
                # grid-invariant parameter slab: one DMA, VMEM-resident
                pl.BlockSpec((P_ROWS, SLAB_W), lambda i: (0, 0)),
                # final-layer bias scalar lives in SMEM
                pl.BlockSpec(memory_space=pltpu.MemorySpace.SMEM),
            ],
            out_specs=pl.BlockSpec((1, tile_b), lambda i: (0, i)),
        ),
        compiler_params=pltpu.CompilerParams(
            dimension_semantics=("parallel",)),
    )(x_pad, param_slab, final_bias)
    return out.reshape(b, 1)


# ---------------------- host-side parameter preparation ---------------------
def pack_params(mean_bias, std_bias, we, be, hidden, wf, bf):
    """Folds Normalize into the first cost layer, fuses the x-side weights and
    packs everything into a single bf16 [P_ROWS, SLAB_W] slab (one DMA) plus a
    single f32 SMEM scalar for the final bias."""
    mean_bias = np.asarray(mean_bias, np.float32)
    std_bias = np.asarray(std_bias, np.float32)
    we = np.asarray(we, np.float32)
    be = np.asarray(be, np.float32)
    wf = np.asarray(wf, np.float32)
    bf = np.asarray(bf, np.float32)

    slab = np.zeros((P_ROWS, SLAB_W), np.float32)

    w1, b1 = (np.asarray(hidden[0][0], np.float32),
              np.asarray(hidden[0][1], np.float32))
    inv_std = 1.0 / std_bias                                  # [NC]

    # fused x-side weight: cols 0:32 = encoder (zero-padded to take full x),
    #                      cols 32:64 = folded cont-var rows of W1
    wx = np.zeros((IN_PAD, SLAB_W), np.float32)
    wx[NUM_CONT_VARS:IN_DIM, :EMBEDDING_SIZE] = we
    wx[:NUM_CONT_VARS, NUM_FEAT:] = w1[:NUM_CONT_VARS, :] * inv_std[:, None]
    slab[_OFFS["wx"]:_OFFS["wx"] + IN_PAD] = wx

    slab[_OFFS["be"], :EMBEDDING_SIZE] = be.reshape(-1)

    slab[_OFFS["wb"]:_OFFS["wb"] + EMBEDDING_SIZE, :NUM_FEAT] = w1[NUM_CONT_VARS:, :]
    b1p = b1 - (mean_bias * inv_std)[None, :] @ w1[:NUM_CONT_VARS, :]
    slab[_OFFS["b1"], :NUM_FEAT] = b1p.reshape(-1)

    for i in range(1, HIDDEN_LAYERS):
        w, b = (np.asarray(hidden[i][0], np.float32),
                np.asarray(hidden[i][1], np.float32))
        slab[_OFFS[f"w{i + 1}"]:_OFFS[f"w{i + 1}"] + NUM_FEAT, :NUM_FEAT] = w
        slab[_OFFS[f"b{i + 1}"], :NUM_FEAT] = b.reshape(-1)

    slab[_OFFS["wf"], :NUM_FEAT] = wf.reshape(-1)

    slab_bf16 = jnp.asarray(slab, dtype=jnp.bfloat16)
    bf_scalar = jnp.asarray(bf.reshape(1), dtype=jnp.float32)
    return slab_bf16, bf_scalar


def pad_inputs(x):
    """Zero-pad x from IN_DIM to IN_PAD columns and cast to bf16 (host-side)."""
    b = x.shape[0]
    xp = jnp.zeros((b, IN_PAD), jnp.float32).at[:, :IN_DIM].set(x)
    return xp.astype(jnp.bfloat16)


# --------------------------- deterministic params ---------------------------
def xavier_normal(key, fan_in, fan_out):
    std = float(np.sqrt(2.0 / (fan_in + fan_out)))
    # stored as [in, out] so forward is x @ W (transpose of nn.Linear storage)
    return jax.random.normal(key, (fan_in, fan_out), dtype=jnp.float32) * std


def linear_bias(key, fan_in, fan_out):
    bound = 1.0 / float(np.sqrt(fan_in))
    return jax.random.uniform(key, (1, fan_out), dtype=jnp.float32,
                              minval=-bound, maxval=bound)


def build_params(key):
    keys = jax.random.split(key, 2 * (HIDDEN_LAYERS + 2) + 2)
    k_it = iter(keys)

    mean_bias = jax.random.normal(next(k_it), (NUM_CONT_VARS,), dtype=jnp.float32)
    std_bias = jax.random.uniform(next(k_it), (NUM_CONT_VARS,), dtype=jnp.float32,
                                  minval=0.5, maxval=2.0)

    we = xavier_normal(next(k_it), CATE_IN, EMBEDDING_SIZE)
    be = linear_bias(next(k_it), CATE_IN, EMBEDDING_SIZE)

    hidden = []
    for _ in range(HIDDEN_LAYERS):
        w = xavier_normal(next(k_it), NUM_FEAT, NUM_FEAT)
        b = linear_bias(next(k_it), NUM_FEAT, NUM_FEAT)
        hidden.append((w, b))

    wf = xavier_normal(next(k_it), NUM_FEAT, 1)
    bf = linear_bias(next(k_it), NUM_FEAT, 1)

    return mean_bias, std_bias, we, be, hidden, wf, bf


# ------------------------------ pure-JAX reference ---------------------------
def reference_forward(x, mean_bias, std_bias, we, be, hidden, wf, bf):
    nc = NUM_CONT_VARS
    enc = jnp.maximum(x[:, nc:] @ we + be, 0.0)
    h = jnp.concatenate([x[:, :nc], enc], axis=-1)
    mean = jnp.concatenate([mean_bias, jnp.zeros((EMBEDDING_SIZE,), jnp.float32)])
    std = jnp.concatenate([std_bias, jnp.ones((EMBEDDING_SIZE,), jnp.float32)])
    h = (h - mean) / std
    for w, b in hidden:
        h = jnp.maximum(h @ w + b, 0.0)
    return jnp.maximum(h @ wf + bf, 0.0)


# ----------------------------------- main ------------------------------------
if __name__ == "__main__":
    key = jax.random.PRNGKey(0)
    k_x, k_p = jax.random.split(key)

    x = jax.random.normal(k_x, (BATCH, IN_DIM), dtype=jnp.float32)
    mean_bias, std_bias, we, be, hidden, wf, bf = build_params(k_p)

    param_slab, final_bias = pack_params(mean_bias, std_bias, we, be, hidden, wf, bf)
    x_pad = pad_inputs(x)

    out = kcost_forward(x_pad, param_slab, final_bias)
    out = jax.block_until_ready(out)

    ref = reference_forward(x, mean_bias, std_bias, we, be, hidden, wf, bf)
    assert out.shape == (BATCH, 1), out.shape
    # bf16 weights/activations (single-pass MXU) vs the f32 reference: the
    # tolerance is loosened accordingly; structural bugs still show up as
    # O(0.5-1) discrepancies.
    np.testing.assert_allclose(np.asarray(out), np.asarray(ref),
                               rtol=5e-2, atol=8e-2)

    print("KERNEL_OK")
</pallas_src>

<mosaic_0001>
module attributes {stable_mosaic.version = 11 : i64} {
  func.func @_kcost_kernel(%arg0: i32, %arg1: memref<128x32xbf16, #tpu.memory_space<vmem>>, %arg2: memref<160x64xbf16, #tpu.memory_space<vmem>>, %arg3: memref<1xf32, #tpu.memory_space<smem>>, %arg4: memref<1x128xf32, #tpu.memory_space<vmem>>) attributes {dimension_semantics = [#tpu.dimension_semantics<parallel>], iteration_bounds = array<i64: 2>, scalar_prefetch = 0 : i64, scratch_operands = 0 : i64, tpu.core_type = #tpu.core_type<tc>, window_params = [{transform_indices = @transform_0, window_bounds = array<i64: 128, 32>}, {pipeline_mode = #tpu.pipeline_mode<synchronous>, transform_indices = @transform_1, window_bounds = array<i64: 160, 64>}, {transform_indices = @transform_2, window_bounds = array<i64: 1>}, {transform_indices = @transform_3, window_bounds = array<i64: 1, 128>}]} {
    %c0 = arith.constant 0 : index
    %c0_0 = arith.constant 0 : index
    %0 = vector.load %arg1[%c0, %c0_0] : memref<128x32xbf16, #tpu.memory_space<vmem>>, vector<128x32xbf16>
    %c0_1 = arith.constant 0 : index
    %c0_2 = arith.constant 0 : index
    %1 = vector.load %arg2[%c0_1, %c0_2] : memref<160x64xbf16, #tpu.memory_space<vmem>>, vector<32x64xbf16>
    %cst = arith.constant dense<0.000000e+00> : vector<128x64xf32>
    %2 = tpu.matmul %0, %1, %cst {dimension_numbers = #tpu.dot_dimension_numbers<[1], [0], [0], [1], [0, 0, 1, 1], [], []>} : vector<128x32xbf16>, vector<32x64xbf16>, vector<128x64xf32> -> vector<128x64xf32>
    %3 = vector.extract_strided_slice %2 {offsets = [0, 0], sizes = [128, 32], strides = [1, 1]} : vector<128x64xf32> to vector<128x32xf32>
    %c32 = arith.constant 32 : index
    %c0_3 = arith.constant 0 : index
    %4 = vector.load %arg2[%c32, %c0_3] : memref<160x64xbf16, #tpu.memory_space<vmem>>, vector<1x32xbf16>
    %5 = arith.extf %4 : vector<1x32xbf16> to vector<1x32xf32>
    %6 = vector.broadcast %5 : vector<1x32xf32> to vector<128x32xf32>
    %7 = arith.addf %3, %6 : vector<128x32xf32>
    %cst_4 = arith.constant 0.000000e+00 : f32
    %8 = vector.broadcast %cst_4 : f32 to vector<128x32xf32>
    %9 = arith.maximumf %7, %8 : vector<128x32xf32>
    %10 = vector.extract_strided_slice %2 {offsets = [0, 32], sizes = [128, 32], strides = [1, 1]} : vector<128x64xf32> to vector<128x32xf32>
    %11 = arith.truncf %9 : vector<128x32xf32> to vector<128x32xbf16>
    %c48 = arith.constant 48 : index
    %c0_5 = arith.constant 0 : index
    %12 = vector.load %arg2[%c48, %c0_5] : memref<160x64xbf16, #tpu.memory_space<vmem>>, vector<32x32xbf16>
    %cst_6 = arith.constant dense<0.000000e+00> : vector<128x32xf32>
    %13 = tpu.matmul %11, %12, %cst_6 {dimension_numbers = #tpu.dot_dimension_numbers<[1], [0], [0], [1], [0, 0, 1, 1], [], []>} : vector<128x32xbf16>, vector<32x32xbf16>, vector<128x32xf32> -> vector<128x32xf32>
    %14 = arith.addf %13, %10 : vector<128x32xf32>
    %c80 = arith.constant 80 : index
    %c0_7 = arith.constant 0 : index
    %15 = vector.load %arg2[%c80, %c0_7] : memref<160x64xbf16, #tpu.memory_space<vmem>>, vector<1x32xbf16>
    %16 = arith.extf %15 : vector<1x32xbf16> to vector<1x32xf32>
    %17 = vector.broadcast %16 : vector<1x32xf32> to vector<128x32xf32>
    %18 = arith.addf %14, %17 : vector<128x32xf32>
    %cst_8 = arith.constant 0.000000e+00 : f32
    %19 = vector.broadcast %cst_8 : f32 to vector<128x32xf32>
    %20 = arith.maximumf %18, %19 : vector<128x32xf32>
    %21 = arith.truncf %20 : vector<128x32xf32> to vector<128x32xbf16>
    %c96 = arith.constant 96 : index
    %c0_9 = arith.constant 0 : index
    %22 = vector.load %arg2[%c96, %c0_9] : memref<160x64xbf16, #tpu.memory_space<vmem>>, vector<32x32xbf16>
    %cst_10 = arith.constant dense<0.000000e+00> : vector<128x32xf32>
    %23 = tpu.matmul %21, %22, %cst_10 {dimension_numbers = #tpu.dot_dimension_numbers<[1], [0], [0], [1], [0, 0, 1, 1], [], []>} : vector<128x32xbf16>, vector<32x32xbf16>, vector<128x32xf32> -> vector<128x32xf32>
    %c128 = arith.constant 128 : index
    %c0_11 = arith.constant 0 : index
    %24 = vector.load %arg2[%c128, %c0_11] : memref<160x64xbf16, #tpu.memory_space<vmem>>, vector<1x32xbf16>
    %25 = arith.extf %24 : vector<1x32xbf16> to vector<1x32xf32>
    %26 = vector.broadcast %25 : vector<1x32xf32> to vector<128x32xf32>
    %27 = arith.addf %23, %26 : vector<128x32xf32>
    %cst_12 = arith.constant 0.000000e+00 : f32
    %28 = vector.broadcast %cst_12 : f32 to vector<128x32xf32>
    %29 = arith.maximumf %27, %28 : vector<128x32xf32>
    %c144 = arith.constant 144 : index
    %c0_13 = arith.constant 0 : index
    %30 = vector.load %arg2[%c144, %c0_13] : memref<160x64xbf16, #tpu.memory_space<vmem>>, vector<1x32xbf16>
    %31 = arith.extf %30 : vector<1x32xbf16> to vector<1x32xf32>
    %32 = vector.broadcast %31 : vector<1x32xf32> to vector<128x32xf32>
    %33 = arith.mulf %29, %32 : vector<128x32xf32>
    %cst_14 = arith.constant dense<0.000000e+00> : vector<128xf32>
    %34 = vector.multi_reduction <add>, %33, %cst_14 [1] : vector<128x32xf32> to vector<128xf32>
    %c0_15 = arith.constant 0 : index
    %35 = memref.load %arg3[%c0_15] : memref<1xf32, #tpu.memory_space<smem>>
    %36 = vector.broadcast %35 : f32 to vector<128xf32>
    %37 = arith.addf %34, %36 : vector<128xf32>
    %cst_16 = arith.constant 0.000000e+00 : f32
    %38 = vector.broadcast %cst_16 : f32 to vector<128xf32>
    %39 = arith.maximumf %37, %38 : vector<128xf32>
    %40 = vector.shape_cast %39 : vector<128xf32> to vector<1x128xf32>
    %c0_17 = arith.constant 0 : index
    %c0_18 = arith.constant 0 : index
    %41 = vector.load %arg4[%c0_17, %c0_18] : memref<1x128xf32, #tpu.memory_space<vmem>>, vector<1x128xf32>
    tpu.vector_store %arg4[%c0_17, %c0_18], %40 {strides = array<i32>} : memref<1x128xf32, #tpu.memory_space<vmem>>, vector<1x128xf32>,
    return
  }
  func.func @transform_0(%arg0: i32) -> (i32, i32) {
    %c0_i32 = arith.constant 0 : i32
    %c0_i32_0 = arith.constant 0 : i32
    return %arg0, %c0_i32 : i32, i32
  }
  func.func @transform_1(%arg0: i32) -> (i32, i32) {
    %c0_i32 = arith.constant 0 : i32
    %c0_i32_0 = arith.constant 0 : i32
    %c0_i32_1 = arith.constant 0 : i32
    return %c0_i32, %c0_i32_0 : i32, i32
  }
  func.func @transform_2(%arg0: i32) -> i32 {
    %c0_i32 = arith.constant 0 : i32
    %c0_i32_0 = arith.constant 0 : i32
    return %c0_i32 : i32
  }
  func.func @transform_3(%arg0: i32) -> (i32, i32) {
    %c0_i32 = arith.constant 0 : i32
    %c0_i32_0 = arith.constant 0 : i32
    return %c0_i32, %arg0 : i32, i32
  }
}

</mosaic_0001>

<bundles_post_ra>
// kernel: tpu_custom_call.1
= control target key start
LH: loop header
LB: loop body
LE: loop exit
PB: predicated region body
PF: predicated region fallthrough
CT: control target
= control target key end

     0   :  { %s1735_s0 = inlined_call_operand.vmem [shape: bf16[256,32], index: 0, kind: input, shape index: {}]   ;;  %s1736_s1 = inlined_call_operand.vmem [shape: bf16[160,64], index: 1, kind: input, shape index: {}]   ;;  %s1737_s2 = inlined_call_operand.<no memory space> [shape: f32[1], index: 2, kind: input, shape index: {}]   ;;  %s1738_s3 = inlined_call_operand.hbm [shape: f32[1,256], index: 3, kind: output, shape index: {}]  }
   0x1   :  { %8 = sst [smem:[#allocation2]] %s1737_s2 }
   0x2   :  { %9 = vsyncpa [#allocation4], 0 }
   0x3   :  { %11 = vsyncpa [#allocation4 + $0x1], 0  ;;  %s1403_s14 = smov 0   ;;  %s1405_s15 = smov 0  }
   0x4   :  { %s1407_s16 = smov 0   ;;  %s1409_s17 = smov 0  }
   0x5 LB: > { %s1118_s2 = sadd.s32 4294967295, %s1376_s17   ;;  %s1119_s18 = sadd.s32 4294967294, %s1376_s17   ;;  %s1376_s17 = sphi %s1409_s17, %s1744_s17   ;;  %s1372_s16 = sphi %s1407_s16, %s1743_s16   ;;  %s1368_s15 = sphi %s1405_s15, %s1742_s15   ;;  %s1364_s14 = sphi %s1403_s14, %s1741_s14  }
   0x6   : > { %s1426_s19 = sadd.s32 1, %s1376_s17   ;;  %s92_s20 = sadd.s32 1, %s1372_s16 }
   0x7   : > { %s89_s21 = ssub.s32 %s1376_s17, %s1426_s19  ;;  %p102_p0 = scmp.ne.s32.totalorder %s1372_s16, %s1368_s15 }
   0x8   : > { %p90_p1 = scmp.eq.s32.totalorder %s89_s21, 0  ;;  %p103_p2 = scmp.eq.s32.totalorder %s1118_s2, 1 }
   0x9   : > { %p108_p3 = scmp.ne.s32.totalorder %s1368_s15, %s1364_s14  ;;  %p109_p4 = scmp.eq.s32.totalorder %s1119_s18, 1 }
   0xa   : > { %s1436_s22 = scalar_select %p90_p1, %s1372_s16, %s92_s20  }
   0xb   : > { %p1438_p5 = por %p103_p2, %p102_p0  ;;  %p1442_p6 = por %p109_p4, %p108_p3 }
   0xc   : > { %p1122_p7 = scmp.ge.s32.totalorder %s1376_s17, 1  ;;  %p142_p8 = scmp.lt.s32.totalorder %s1376_s17, 3 }
   0xe   : > { %p143_p9 = pnand %p1122_p7, %p142_p8 }
   0xf   : > { %v1300_v0 = vld [vmem:[%s1736_s1] sm:$0xff] (!%p143_p9)   ;;  %s1451_s27 = sshll.u32 (!%p143_p9), %s1118_s2, 4  ;;  %v1301_v1 = vld [vmem:[%s1736_s1 + $0x8] sm:$0xff] (!%p143_p9)   ;;  %v1310_v2 = vld [vmem:[%s1736_s1 + $0x18] sm:$0xff] (!%p143_p9)   ;;  %vm244_vm0 = vcmask (!%p143_p9), 261120   ;;  %v368_v12 = vlaneseq (!%p143_p9)  ;;  %s1378_s2 = smov (!%p143_p9), 96  }
  0x10   : > { %146 = sbr.rel (%p143_p9) target bundleno = 889 (0x379), region = 32  ;;  %p166_p10 = scmp.lt.s32.totalorder (!%p143_p9), %s1451_s27, 31  ;;  %1196 = vmatprep.subr.bf16.mxu0 (!%p143_p9), %v1300_v0  ;;  %1256 = vmatprep.subr.bf16.mxu1 (!%p143_p9), %v1300_v0  ;;  %v1311_v11 = vld [vmem:[%s1736_s1 + $0x20] sm:$0xff] (!%p143_p9)   ;;  %v366_v14 = vld [vmem:[%s1736_s1 + $0x10] sm:$0x1] (!%p143_p9)  ;;  %vm949_vm1 = vcmask (!%p143_p9), 130112  }
  0x11   : > { %1197 = vmatpush3.bf16.msra.mxu0 (!%p143_p9), %v1300_v0  ;;  %1258 = vmatpush3.bf16.msra.mxu1 (!%p143_p9), %v1300_v0  ;;  %v1476_v13 = vshrl.u32 (!%p143_p9), %v368_v12, 7  ;;  %v367_v15 = vunpack.c.l.bf16 (!%p143_p9), %v366_v14  ;;  %vm956_vm2 = vcmask (!%p143_p9), 195712   ;;  %vm963_vm3 = vcmask (!%p143_p9), 261312   ;;  %s163_s7 = sand.u32 (!%p143_p9), 1, %s1368_s15   ;;  %s1691_s12 = scalar_lea.hbm (!%p143_p9), %s1738_s3, %s1451_s27 }
  0x12   : > { %1198 = vmatprep.subr.bf16.mxu0 (!%p143_p9), %v1301_v1  ;;  %1257 = vmatprep.subr.bf16.mxu1 (!%p143_p9), %v1301_v1  ;;  %vm970_vm4 = vcmask (!%p143_p9), 326912   ;;  %vm977_vm5 = vcmask (!%p143_p9), 392512   ;;  %vm984_vm6 = vcmask (!%p143_p9), 458112   ;;  %vm991_vm7 = vcmask (!%p143_p9), 523712   ;;  %s164_s8 = scalar_lea.vmem (!%p143_p9), [#allocation3], %s163_s7  ;;  %s1052_s13 = scalar_lea.sflag (!%p143_p9), [#allocation4], %s163_s7 }
  0x13   : > { %v1482_v16 = vsub.s32 (!%p143_p9), 0, %v1476_v13  ;;  %vm998_vm8 = vcmask (!%p143_p9), 589312   ;;  %vm1005_vm9 = vcmask (!%p143_p9), 654912   ;;  %vm1012_vm10 = vcmask (!%p143_p9), 720512   ;;  %s1379_s18 = smov (!%p143_p9), [#allocation3]  }
  0x14   : > { %vm1019_vm11 = vcmask (!%p143_p9), 786112   ;;  %vm1026_vm12 = vcmask (!%p143_p9), 851712   ;;  %vm1033_vm13 = vcmask (!%p143_p9), 917312   ;;  %vm1040_vm14 = vcmask (!%p143_p9), 982912   ;;  %s1318_s20 = sshll.u32 (!%p143_p9), %s1379_s18, 4  ;;  %s1319_s20 = int_to_ptr.vmem [resolvable:$false] %s1318_s20 }
  0x15   : > { %1199 = vmatpush3.bf16.msra.mxu0 (!%p143_p9), %v1301_v1  ;;  %1259 = vmatpush3.bf16.msra.mxu1 (!%p143_p9), %v1301_v1  ;;  %v1485_v17 = vrot.slane (!%p143_p9), %v367_v15, %v1482_v16  ;;  %vm1047_vm15 = vcmask (!%p143_p9), 1048512   ;;  %s1320_s21 = scalar_lea.vmem (!%p143_p9), %s1319_s20, 32 }
  0x16   : > { %1216 = vmatprep.subr.bf16.mxu1 (!%p143_p9), %v1310_v2 }
  0x17   : > { %s167_s30 = scalar_select %p166_p10, %s1451_s27, 31 }
  0x19   : > { %s1124_s6 = sshll.u32 %s167_s30, 2 }
  0x1a   : > { %s169_s9 = scalar_lea.vmem %s1735_s0, %s1124_s6  ;;  %s888_s6 = sld [smem:[#allocation2]] }
  0x1b   : > { %v1302_v3 = vld [vmem:[%s169_s9] sm:$0xff]   ;;  %v1303_v4 = vld [vmem:[%s169_s9 + $0x8] sm:$0xff]   ;;  %v1304_v5 = vld [vmem:[%s169_s9 + $0x10] sm:$0xff]  }
  0x1c   : > { %1200 = vmatprep.mubr.msk.bf16.mxu0 %vm244_vm0, %v1302_v3  ;;  %v1306_v6 = vld [vmem:[%s169_s9 + $0x20] sm:$0xff]   ;;  %v1307_v7 = vld [vmem:[%s169_s9 + $0x28] sm:$0xff]   ;;  %v1308_v8 = vld [vmem:[%s169_s9 + $0x30] sm:$0xff]  }
  0x1d   : > { %1201 = vmatmul.mubr.msk.bf16.vlgmr.msra.gmra.mrb[0].mxu0 %vm244_vm0, %v1303_v4  ;;  %1208 = vmatprep.mubr.msk.bf16.mxu1 %vm244_vm0, %v1306_v6  ;;  %v1305_v9 = vld [vmem:[%s169_s9 + $0x18] sm:$0xff]  }
  0x1e   : > { %1204 = vmatprep.mubr.msk.bf16.mxu0 %vm244_vm0, %v1304_v5  ;;  %1209 = vmatmul.mubr.msk.bf16.vlgmr.msra.gmra.mrb[0].mxu1 %vm244_vm0, %v1307_v7  ;;  %v1309_v10 = vld [vmem:[%s169_s9 + $0x38] sm:$0xff]   ;;  %s1064_s9 = sshll.u32 %s164_s8, 4  ;;  %s1693_s9 = int_to_ptr.vmem [resolvable:$true] %s1064_s9 }
  0x1f   : > { %1212 = vmatprep.mubr.msk.bf16.mxu1 %vm244_vm0, %v1308_v8  ;;  %1217 = vmatpush3.bf16.msra.mxu1 %v1310_v2  ;;  %v1312_v8 = vld [vmem:[%s1736_s1 + $0x30] sm:$0xff]   ;;  %p1321_p0 = scmp.lt.s32.totalorder %s1693_s9, %s1319_s20 }
  0x20   : > { %1218 = vmatprep.subr.bf16.mxu1 %v1311_v11  ;;  %1236 = vmatprep.subr.bf16.mxu0 %v1312_v8 }
  0x21   : > { %1237 = vmatpush3.bf16.msra.mxu0 %v1312_v8 }
  0x23   : > { %1219 = vmatpush3.bf16.msra.mxu1 %v1311_v11  ;;  %v1313_v11 = vld [vmem:[%s1736_s1 + $0x38] sm:$0xff]  }
  0x24   : > { %1238 = vmatprep.subr.bf16.mxu0 %v1313_v11 }
  0x25   : > { %1205 = vmatmul.mubr.msk.bf16.gmra.mrb[4].mxu0 %vm244_vm0, %v1305_v9 }
  0x26   : > { %1213 = vmatmul.mubr.msk.bf16.gmra.mrb[4].mxu1 %vm244_vm0, %v1309_v10  ;;  %1239 = vmatpush3.bf16.msra.mxu0 %v1313_v11 }
  0xf0   : > { %v1202_v18 = vpop.f32.mrb[0].mxu0 }
  0xf1   : > { %v374_v19 = vadd.f32 %v1202_v18, %v1485_v17  ;;  %448 = vrot.lane.b32.xlu1 %v1202_v18, %s1378_s2  ;;  %v303_v20 = vpop.f32.mrb[1].mxu0  ;;  %v1210_v26 = vpop.f32.mrb[0].mxu1 }
  0xf2   : > { %v372_v21 = vadd.f32 %v1485_v17, %v303_v20  ;;  %444 = vrot.lane.b32.xlu0 %v303_v20, %s1378_s2  ;;  %v1203_v22 = vpop.f32.mrb[2].mxu0  ;;  %v382_v29 = vadd.f32 %v1210_v26, %v1485_v17  ;;  %v335_v30 = vpop.f32.mrb[1].mxu1 }
  0xf3   : > { %v375_v23 = vadd.f32 %v1203_v22, %v1485_v17  ;;  %v306_v24 = vpop.f32.mrb[3].mxu0  ;;  %v390_v27 = vmax.f32 %v374_v19, 0.0  ;;  %v380_v33 = vadd.f32 %v1485_v17, %v335_v30  ;;  %v1211_v34 = vpop.f32.mrb[2].mxu1  ;;  %v613_v19 = vld [vmem:[%s1736_s1 + $0x28] sm:$0x1] }
  0xf4   : > { %v373_v25 = vadd.f32 %v1485_v17, %v306_v24  ;;  %v388_v31 = vmax.f32 %v372_v21, 0.0  ;;  %v398_v36 = vmax.f32 %v382_v29, 0.0  ;;  %v383_v37 = vadd.f32 %v1211_v34, %v1485_v17  ;;  %v338_v38 = vpop.f32.mrb[3].mxu1 }
  0xf5   : > { %v391_v28 = vmax.f32 %v375_v23, 0.0  ;;  %450 = vrot.lane.b32.xlu1 %v1203_v22, %s1378_s2  ;;  %v396_v41 = vmax.f32 %v380_v33, 0.0  ;;  %v381_v42 = vadd.f32 %v1485_v17, %v338_v38  ;;  %v614_v21 = vunpack.c.l.bf16 %v613_v19 }
  0xf6   : > { %v389_v32 = vmax.f32 %v373_v25, 0.0  ;;  %446 = vrot.lane.b32.xlu0 %v306_v24, %s1378_s2  ;;  %v399_v45 = vmax.f32 %v383_v37, 0.0 }
  0xf7   : > { %v405_v35 = vpack.c.bf16 %v391_v28, %v390_v27  ;;  %v397_v48 = vmax.f32 %v381_v42, 0.0  ;;  %v1537_v23 = vrot.slane %v614_v21, %v1482_v16 }
  0xf8   : > { %v404_v39 = vpack.c.bf16 %v389_v32, %v388_v31  ;;  %v1206_v40 = vpop.f32.mrb[4].mxu0  ;;  %v409_v52 = vpack.c.bf16 %v399_v45, %v398_v36 }
  0xf9   : > { %v378_v43 = vadd.f32 %v1206_v40, %v1485_v17  ;;  %v319_v44 = vpop.f32.mrb[5].mxu0  ;;  %v408_v54 = vpack.c.bf16 %v397_v48, %v396_v41  ;;  %v1214_v55 = vpop.f32.mrb[4].mxu1 }
  0xfa   : > { %v376_v46 = vadd.f32 %v1485_v17, %v319_v44  ;;  %1220 = vmatprep.mubr.msk.bf16.mxu1 %vm244_vm0, %v404_v39  ;;  %452 = vrot.lane.b32.xlu0 %v319_v44, %s1378_s2  ;;  %v1207_v47 = vpop.f32.mrb[6].mxu0  ;;  %v386_v57 = vadd.f32 %v1214_v55, %v1485_v17  ;;  %v351_v58 = vpop.f32.mrb[5].mxu1 }
  0xfb   : > { %v394_v49 = vmax.f32 %v378_v43, 0.0  ;;  %v379_v50 = vadd.f32 %v1207_v47, %v1485_v17  ;;  %v322_v51 = vpop.f32.mrb[7].mxu0  ;;  %1221 = vmatmul.mubr.msk.bf16.vlgmr.msra.gmra.mrb[8].mxu1 %vm244_vm0, %v405_v35  ;;  %v384_v61 = vadd.f32 %v1485_v17, %v351_v58  ;;  %v1215_v62 = vpop.f32.mrb[6].mxu1 }
  0xfc   : > { %v377_v53 = vadd.f32 %v1485_v17, %v322_v51  ;;  %454 = vrot.lane.b32.xlu1 %v322_v51, %s1378_s2  ;;  %v392_v59 = vmax.f32 %v376_v46, 0.0  ;;  %v402_v0 = vmax.f32 %v386_v57, 0.0  ;;  %v387_v1 = vadd.f32 %v1215_v62, %v1485_v17  ;;  %v354_v2 = vpop.f32.mrb[7].mxu1 }
  0xfd   : > { %v395_v56 = vmax.f32 %v379_v50, 0.0  ;;  %v400_v4 = vmax.f32 %v384_v61, 0.0  ;;  %v385_v5 = vadd.f32 %v1485_v17, %v354_v2 }
  0xfe   : > { %v393_v60 = vmax.f32 %v377_v53, 0.0  ;;  %456 = vrot.lane.b32.xlu0 %v1206_v40, %s1378_s2  ;;  %v403_v6 = vmax.f32 %v387_v1, 0.0 }
  0xff   : > { %v407_v63 = vpack.c.bf16 %v395_v56, %v394_v49  ;;  %v401_v7 = vmax.f32 %v385_v5, 0.0 }
 0x100   : > { %v406_v3 = vpack.c.bf16 %v393_v60, %v392_v59  ;;  %458 = vrot.lane.b32.xlu1 %v1207_v47, %s1378_s2  ;;  %v411_v9 = vpack.c.bf16 %v403_v6, %v402_v0 }
 0x101   : > { %v410_v10 = vpack.c.bf16 %v401_v7, %v400_v4 }
 0x102   : > { %460 = vrot.lane.b32.xlu0 %v335_v30, %s1378_s2  ;;  %1224 = vmatprep.mubr.msk.bf16.mxu1 %vm244_vm0, %v406_v3 }
 0x103   : > { %1225 = vmatmul.mubr.msk.bf16.gmra.mrb[12].mxu1 %vm244_vm0, %v407_v63 }
 0x104   : > { %462 = vrot.lane.b32.xlu1 %v338_v38, %s1378_s2  ;;  %1228 = vmatprep.mubr.msk.bf16.mxu1 %vm244_vm0, %v408_v54 }
 0x106   : > { %464 = vrot.lane.b32.xlu0 %v1210_v26, %s1378_s2 }
 0x108   : > { %466 = vrot.lane.b32.xlu1 %v1211_v34, %s1378_s2 }
 0x10a   : > { %468 = vrot.lane.b32.xlu0 %v351_v58, %s1378_s2 }
 0x10b   : > { %1229 = vmatmul.mubr.msk.bf16.gmra.mrb[16].mxu1 %vm244_vm0, %v409_v52 }
 0x10c   : > { %470 = vrot.lane.b32.xlu1 %v354_v2, %s1378_s2  ;;  %1232 = vmatprep.mubr.msk.bf16.mxu1 %vm244_vm0, %v410_v10 }
 0x10e   : > { %472 = vrot.lane.b32.xlu0 %v1214_v55, %s1378_s2 }
 0x110   : > { %474 = vrot.lane.b32.xlu1 %v1215_v62, %s1378_s2  ;;  %s1314_s2 = scalar_lea.vmem %s1693_s9, 16 }
 0x111   : > { %p1315_p11 = scmp.ne.s32.totalorder %s1693_s9, %s1314_s2  ;;  %p1322_p1 = scmp.lt.s32.totalorder %s1320_s21, %s1314_s2 }
 0x113   : > { %1233 = vmatmul.mubr.msk.bf16.gmra.mrb[20].mxu1 %vm244_vm0, %v411_v9  ;;  %p1316_p12 = pnand %p1315_p11, %p1438_p5  ;;  %p1323_p2 = por %p1322_p1, %p1321_p0 }
 0x115   : > { %p1317_p13 = pneg %p1316_p12 }
 0x117   : > { %p1324_p3 = pnand %p1323_p2, %p1317_p13 }
 0x163   : > { %v449_v15 = vpop.permute.xlu1 %448 }
 0x164   : > { %v445_v14 = vpop.permute.xlu0 %444 }
 0x167   : > { %v451_v18 = vpop.permute.xlu1 %450 }
 0x168   : > { %v447_v17 = vpop.permute.xlu0 %446 }
 0x16c   : > { %v453_v20 = vpop.permute.xlu0 %452 }
 0x16e   : > { %v455_v22 = vpop.permute.xlu1 %454 }
 0x170   : > { %v457_v24 = vpop.permute.xlu0 %456 }
 0x172   : > { %v459_v28 = vpop.permute.xlu1 %458 }
 0x174   : > { %v461_v37 = vpop.permute.xlu0 %460 }
 0x176   : > { %v463_v41 = vpop.permute.xlu1 %462 }
 0x178   : > { %v465_v54 = vpop.permute.xlu0 %464 }
 0x17a   : > { %v467_v58 = vpop.permute.xlu1 %466 }
 0x17c   : > { %v469_v4 = vpop.permute.xlu0 %468 }
 0x17e   : > { %v471_v11 = vpop.permute.xlu1 %470 }
 0x180   : > { %v473_v21 = vpop.permute.xlu0 %472 }
 0x1ce   : > { %v1222_v25 = vpop.f32.mrb[8].mxu1 }
 0x1cf   : > { %v559_v26 = vadd.f32 %v1222_v25, %v449_v15  ;;  %v550_v27 = vpop.f32.mrb[9].mxu1 }
 0x1d0   : > { %v551_v29 = vadd.f32 %v550_v27, %v445_v14  ;;  %v1223_v30 = vpop.f32.mrb[10].mxu1 }
 0x1d1   : > { %v621_v31 = vadd.f32 %v1537_v23, %v559_v26  ;;  %v562_v32 = vadd.f32 %v1223_v30, %v451_v18  ;;  %v553_v33 = vpop.f32.mrb[11].mxu1 }
 0x1d2   : > { %v619_v34 = vadd.f32 %v1537_v23, %v551_v29  ;;  %v554_v35 = vadd.f32 %v553_v33, %v447_v17  ;;  %v475_v29 = vpop.permute.xlu1 %474 }
 0x1d3   : > { %v622_v36 = vadd.f32 %v1537_v23, %v562_v32  ;;  %v637_v39 = vmax.f32 %v621_v31, 0.0 }
 0x1d4   : > { %v620_v38 = vadd.f32 %v1537_v23, %v554_v35  ;;  %v635_v42 = vmax.f32 %v619_v34, 0.0 }
 0x1d5   : > { %v638_v40 = vmax.f32 %v622_v36, 0.0 }
 0x1d6   : > { %v636_v43 = vmax.f32 %v620_v38, 0.0  ;;  %v1226_v44 = vpop.f32.mrb[12].mxu1 }
 0x1d7   : > { %v652_v45 = vpack.c.bf16 %v638_v40, %v637_v39  ;;  %v575_v46 = vadd.f32 %v1226_v44, %v457_v24  ;;  %v566_v47 = vpop.f32.mrb[13].mxu1 }
 0x1d8   : > { %v651_v48 = vpack.c.bf16 %v636_v43, %v635_v42  ;;  %v567_v49 = vadd.f32 %v566_v47, %v453_v20  ;;  %v1227_v50 = vpop.f32.mrb[14].mxu1 }
 0x1d9   : > { %v625_v51 = vadd.f32 %v1537_v23, %v575_v46  ;;  %v578_v52 = vadd.f32 %v1227_v50, %v459_v28  ;;  %v569_v53 = vpop.f32.mrb[15].mxu1  ;;  %v663_v46 = vld [vmem:[%s1736_s1 + $0x40] sm:$0x1] }
 0x1da   : > { %v623_v55 = vadd.f32 %v1537_v23, %v567_v49  ;;  %v570_v56 = vadd.f32 %v569_v53, %v455_v22  ;;  %1240 = vmatprep.mubr.msk.bf16.mxu0 %vm244_vm0, %v651_v48  ;;  %v664_v47 = vunpack.c.l.bf16 %v663_v46  ;;  %v818_v48 = vld [vmem:[%s1736_s1 + $0x48] sm:$0x1] }
 0x1db   : > { %v626_v57 = vadd.f32 %v1537_v23, %v578_v52  ;;  %1241 = vmatmul.mubr.msk.bf16.vlgmr.msra.gmra.mrb[8].mxu0 %vm244_vm0, %v652_v45  ;;  %v641_v60 = vmax.f32 %v625_v51, 0.0  ;;  %v819_v49 = vunpack.c.l.bf16 %v818_v48 }
 0x1dc   : > { %v624_v59 = vadd.f32 %v1537_v23, %v570_v56  ;;  %v639_v62 = vmax.f32 %v623_v55, 0.0 }
 0x1dd   : > { %v642_v61 = vmax.f32 %v626_v57, 0.0  ;;  %v1574_v53 = vrot.slane %v819_v49, %v1482_v16 }
 0x1de   : > { %v640_v63 = vmax.f32 %v624_v59, 0.0  ;;  %v1230_v0 = vpop.f32.mrb[16].mxu1 }
 0x1df   : > { %v654_v1 = vpack.c.bf16 %v642_v61, %v641_v60  ;;  %v591_v2 = vadd.f32 %v1230_v0, %v465_v54  ;;  %v582_v3 = vpop.f32.mrb[17].mxu1 }
 0x1e0   : > { %v653_v5 = vpack.c.bf16 %v640_v63, %v639_v62  ;;  %v583_v6 = vadd.f32 %v582_v3, %v461_v37  ;;  %v1231_v7 = vpop.f32.mrb[18].mxu1 }
 0x1e1   : > { %v629_v8 = vadd.f32 %v1537_v23, %v591_v2  ;;  %v594_v9 = vadd.f32 %v1231_v7, %v467_v58  ;;  %v585_v10 = vpop.f32.mrb[19].mxu1 }
 0x1e2   : > { %v627_v14 = vadd.f32 %v1537_v23, %v583_v6  ;;  %v586_v15 = vadd.f32 %v585_v10, %v463_v41  ;;  %1244 = vmatprep.mubr.msk.bf16.mxu0 %vm244_vm0, %v653_v5 }
 0x1e3   : > { %v630_v17 = vadd.f32 %v1537_v23, %v594_v9  ;;  %1245 = vmatmul.mubr.msk.bf16.gmra.mrb[12].mxu0 %vm244_vm0, %v654_v1  ;;  %v645_v19 = vmax.f32 %v629_v8, 0.0 }
 0x1e4   : > { %v628_v18 = vadd.f32 %v1537_v23, %v586_v15  ;;  %v643_v22 = vmax.f32 %v627_v14, 0.0 }
 0x1e5   : > { %v646_v20 = vmax.f32 %v630_v17, 0.0 }
 0x1e6   : > { %v644_v24 = vmax.f32 %v628_v18, 0.0  ;;  %v1234_v25 = vpop.f32.mrb[20].mxu1 }
 0x1e7   : > { %v656_v26 = vpack.c.bf16 %v646_v20, %v645_v19  ;;  %v607_v27 = vadd.f32 %v1234_v25, %v473_v21  ;;  %v598_v28 = vpop.f32.mrb[21].mxu1 }
 0x1e8   : > { %v655_v30 = vpack.c.bf16 %v644_v24, %v643_v22  ;;  %v599_v31 = vadd.f32 %v598_v28, %v469_v4  ;;  %v1235_v32 = vpop.f32.mrb[22].mxu1 }
 0x1e9   : > { %v633_v33 = vadd.f32 %v1537_v23, %v607_v27  ;;  %v610_v34 = vadd.f32 %v1235_v32, %v475_v29  ;;  %v601_v35 = vpop.f32.mrb[23].mxu1 }
 0x1ea   : > { %v631_v36 = vadd.f32 %v1537_v23, %v599_v31  ;;  %v602_v37 = vadd.f32 %v601_v35, %v471_v11  ;;  %1248 = vmatprep.mubr.msk.bf16.mxu0 %vm244_vm0, %v655_v30 }
 0x1eb   : > { %v634_v38 = vadd.f32 %v1537_v23, %v610_v34  ;;  %1249 = vmatmul.mubr.msk.bf16.gmra.mrb[16].mxu0 %vm244_vm0, %v656_v26  ;;  %v649_v40 = vmax.f32 %v633_v33, 0.0 }
 0x1ec   : > { %v632_v39 = vadd.f32 %v1537_v23, %v602_v37  ;;  %v647_v42 = vmax.f32 %v631_v36, 0.0  ;;  %v1570_v23 = vrot.slane %v664_v47, %v1482_v16 }
 0x1ed   : > { %v650_v41 = vmax.f32 %v634_v38, 0.0 }
 0x1ee   : > { %v648_v43 = vmax.f32 %v632_v39, 0.0 }
 0x1ef   : > { %v658_v44 = vpack.c.bf16 %v650_v41, %v649_v40 }
 0x1f0   : > { %v657_v45 = vpack.c.bf16 %v648_v43, %v647_v42 }
 0x1f2   : > { %1252 = vmatprep.mubr.msk.bf16.mxu0 %vm244_vm0, %v657_v45 }
 0x1f3   : > { %1253 = vmatmul.mubr.msk.bf16.gmra.mrb[20].mxu0 %vm244_vm0, %v658_v44 }
 0x2ae   : > { %v1242_v50 = vpop.f32.mrb[8].mxu0 }
 0x2af   : > { %v748_v51 = vadd.f32 %v1242_v50, %v1570_v23  ;;  %v739_v52 = vpop.f32.mrb[9].mxu0 }
 0x2b0   : > { %v740_v54 = vadd.f32 %v739_v52, %v1570_v23  ;;  %v1243_v55 = vpop.f32.mrb[10].mxu0 }
 0x2b1   : > { %v804_v56 = vmax.f32 %v748_v51, 0.0  ;;  %v751_v57 = vadd.f32 %v1243_v55, %v1570_v23  ;;  %v742_v58 = vpop.f32.mrb[11].mxu0 }
 0x2b2   : > { %v802_v59 = vmax.f32 %v740_v54, 0.0  ;;  %v743_v60 = vadd.f32 %v742_v58, %v1570_v23 }
 0x2b3   : > { %v826_v61 = vmul.f32 %v1574_v53, %v804_v56  ;;  %v805_v63 = vmax.f32 %v751_v57, 0.0 }
 0x2b4   : > { %v803_v62 = vmax.f32 %v743_v60, 0.0  ;;  %v824_v1 = vmul.f32 %v1574_v53, %v802_v59 }
 0x2b5   : > { %v846_v0 = vsel %vm244_vm0, %v826_v61, 0.0  ;;  %v827_v14 = vmul.f32 %v1574_v53, %v805_v63 }
 0x2b6   : > { %847 = vadd.xlane.f32.xlu0 %v846_v0  ;;  %v1246_v16 = vpop.f32.mrb[12].mxu0  ;;  %v825_v2 = vmul.f32 %v1574_v53, %v803_v62  ;;  %v840_v11 = vsel %vm244_vm0, %v824_v1, 0.0 }
 0x2b7   : > { %v764_v3 = vadd.f32 %v1246_v16, %v1570_v23  ;;  %v755_v4 = vpop.f32.mrb[13].mxu0  ;;  %v849_v21 = vsel %vm244_vm0, %v827_v14, 0.0 }
 0x2b8   : > { %v756_v5 = vadd.f32 %v755_v4, %v1570_v23  ;;  %v1247_v6 = vpop.f32.mrb[14].mxu0  ;;  %v843_v7 = vsel %vm244_vm0, %v825_v2, 0.0 }
 0x2b9   : > { %v808_v8 = vmax.f32 %v764_v3, 0.0  ;;  %v767_v9 = vadd.f32 %v1247_v6, %v1570_v23  ;;  %844 = vadd.xlane.f32.xlu1 %v843_v7  ;;  %v758_v10 = vpop.f32.mrb[15].mxu0  ;;  %v1624_v6 = vand.u32 127, %v368_v12 }
 0x2ba   : > { %v806_v15 = vmax.f32 %v756_v5, 0.0  ;;  %v759_v17 = vadd.f32 %v758_v10, %v1570_v23  ;;  %841 = vadd.xlane.f32.xlu0 %v840_v11 }
 0x2bb   : > { %v809_v18 = vmax.f32 %v767_v9, 0.0  ;;  %v830_v19 = vmul.f32 %v1574_v53, %v808_v8  ;;  %v1626_v8 = vstv %s888_s6  ;;  %v944_v9 = vadd.s32 4294967288, %v1624_v6 }
 0x2bc   : > { %v807_v20 = vmax.f32 %v759_v17, 0.0  ;;  %v828_v25 = vmul.f32 %v1574_v53, %v806_v15  ;;  %v951_v14 = vadd.s32 4294967280, %v1624_v6  ;;  %v958_v17 = vadd.s32 4294967272, %v1624_v6 }
 0x2bd   : > { %v858_v22 = vsel %vm244_vm0, %v830_v19, 0.0  ;;  %v831_v24 = vmul.f32 %v1574_v53, %v809_v18  ;;  %v947_v15 = vsub.s32 %v944_v9, %v1476_v13 }
 0x2be   : > { %850 = vadd.xlane.f32.xlu0 %v849_v21  ;;  %859 = vadd.xlane.f32.xlu1 %v858_v22  ;;  %v1250_v26 = vpop.f32.mrb[16].mxu0  ;;  %v829_v31 = vmul.f32 %v1574_v53, %v807_v20  ;;  %v852_v36 = vsel %vm244_vm0, %v828_v25, 0.0  ;;  %v942_v20 = vsub.s32 %v1624_v6, %v1476_v13  ;;  %v965_v25 = vadd.s32 4294967264, %v1624_v6 }
 0x2bf   : > { %v780_v27 = vadd.f32 %v1250_v26, %v1570_v23  ;;  %v771_v28 = vpop.f32.mrb[17].mxu0  ;;  %v861_v35 = vsel %vm244_vm0, %v831_v24, 0.0  ;;  %v954_v26 = vsub.s32 %v951_v14, %v1476_v13  ;;  %v1021_v14 = vadd.s32 4294967200, %v1624_v6 }
 0x2c0   : > { %v772_v29 = vadd.f32 %v771_v28, %v1570_v23  ;;  %v1251_v30 = vpop.f32.mrb[18].mxu0  ;;  %v855_v41 = vsel %vm244_vm0, %v829_v31, 0.0  ;;  %v979_v28 = vadd.s32 4294967248, %v1624_v6 }
 0x2c1   : > { %v812_v32 = vmax.f32 %v780_v27, 0.0  ;;  %v783_v33 = vadd.f32 %v1251_v30, %v1570_v23  ;;  %v774_v34 = vpop.f32.mrb[19].mxu0  ;;  %v961_v27 = vsub.s32 %v958_v17, %v1476_v13 }
 0x2c2   : > { %v810_v37 = vmax.f32 %v772_v29, 0.0  ;;  %v775_v38 = vadd.f32 %v774_v34, %v1570_v23  ;;  %862 = vadd.xlane.f32.xlu0 %v861_v35  ;;  %853 = vadd.xlane.f32.xlu1 %v852_v36  ;;  %v986_v29 = vadd.s32 4294967240, %v1624_v6 }
 0x2c3   : > { %v813_v39 = vmax.f32 %v783_v33, 0.0  ;;  %v834_v40 = vmul.f32 %v1574_v53, %v812_v32  ;;  %v972_v32 = vadd.s32 4294967256, %v1624_v6 }
 0x2c4   : > { %v811_v42 = vmax.f32 %v775_v38, 0.0  ;;  %v832_v45 = vmul.f32 %v1574_v53, %v810_v37 }
 0x2c5   : > { %v870_v43 = vsel %vm244_vm0, %v834_v40, 0.0  ;;  %v835_v44 = vmul.f32 %v1574_v53, %v813_v39  ;;  %v968_v39 = vsub.s32 %v965_v25, %v1476_v13 }
 0x2c6   : > { %v1254_v46 = vpop.f32.mrb[20].mxu0  ;;  %856 = vadd.xlane.f32.xlu0 %v855_v41  ;;  %871 = vadd.xlane.f32.xlu1 %v870_v43  ;;  %v864_v55 = vsel %vm244_vm0, %v832_v45, 0.0  ;;  %v833_v56 = vmul.f32 %v1574_v53, %v811_v42  ;;  %v982_v41 = vsub.s32 %v979_v28, %v1476_v13  ;;  %v989_v42 = vsub.s32 %v986_v29, %v1476_v13 }
 0x2c7   : > { %v796_v47 = vadd.f32 %v1254_v46, %v1570_v23  ;;  %v787_v48 = vpop.f32.mrb[21].mxu0  ;;  %v873_v54 = vsel %vm244_vm0, %v835_v44, 0.0  ;;  %v975_v43 = vsub.s32 %v972_v32, %v1476_v13  ;;  %v1007_v45 = vadd.s32 4294967216, %v1624_v6 }
 0x2c8   : > { %v788_v49 = vadd.f32 %v787_v48, %v1570_v23  ;;  %v1255_v50 = vpop.f32.mrb[22].mxu0  ;;  %v867_v63 = vsel %vm244_vm0, %v833_v56, 0.0  ;;  %v1024_v28 = vsub.s32 %v1021_v14, %v1476_v13 }
 0x2c9   : > { %v799_v51 = vadd.f32 %v1255_v50, %v1570_v23  ;;  %v790_v52 = vpop.f32.mrb[23].mxu0  ;;  %v816_v57 = vmax.f32 %v796_v47, 0.0 }
 0x2ca   : > { %v814_v58 = vmax.f32 %v788_v49, 0.0  ;;  %v791_v59 = vadd.f32 %v790_v52, %v1570_v23  ;;  %874 = vadd.xlane.f32.xlu0 %v873_v54  ;;  %865 = vadd.xlane.f32.xlu1 %v864_v55  ;;  %v993_v55 = vadd.s32 4294967232, %v1624_v6 }
 0x2cb   : > { %v817_v62 = vmax.f32 %v799_v51, 0.0  ;;  %v838_v16 = vmul.f32 %v1574_v53, %v816_v57  ;;  %v1014_v57 = vadd.s32 4294967208, %v1624_v6 }
 0x2cc   : > { %v815_v60 = vmax.f32 %v791_v59, 0.0  ;;  %v836_v61 = vmul.f32 %v1574_v53, %v814_v58  ;;  %v1010_v59 = vsub.s32 %v1007_v45, %v1476_v13 }
 0x2cd   : > { %v839_v23 = vmul.f32 %v1574_v53, %v817_v62  ;;  %v882_v3 = vsel %vm244_vm0, %v838_v16, 0.0  ;;  %v1000_v62 = vadd.s32 4294967224, %v1624_v6 }
 0x2ce   : > { %868 = vadd.xlane.f32.xlu0 %v867_v63  ;;  %v876_v0 = vsel %vm244_vm0, %v836_v61, 0.0  ;;  %v837_v1 = vmul.f32 %v1574_v53, %v815_v60 }
 0x2cf   : > { %877 = vadd.xlane.f32.xlu1 %v876_v0  ;;  %v885_v4 = vsel %vm244_vm0, %v839_v23, 0.0 }
 0x2d0   : > { %v879_v2 = vsel %vm244_vm0, %v837_v1, 0.0 }
 0x2d2   : > { %880 = vadd.xlane.f32.xlu0 %v879_v2 }
 0x2d3   : > { %883 = vadd.xlane.f32.xlu1 %v882_v3 }
 0x2d6   : > { %886 = vadd.xlane.f32.xlu0 %v885_v4  ;;  %v996_v4 = vsub.s32 %v993_v55, %v1476_v13 }
 0x343   : > { %v848_v5 = vpop.xlane.xlu0 %847 }
 0x344   : > { %v892_v24 = vadd.f32 %v1626_v8, %v848_v5 }
 0x346   : > { %v845_v7 = vpop.xlane.xlu1 %844  ;;  %v908_v37 = vmax.f32 %v892_v24, 0.0  ;;  %v1035_v24 = vadd.s32 4294967184, %v1624_v6 }
 0x347   : > { %v842_v10 = vpop.xlane.xlu0 %841  ;;  %v891_v53 = vadd.f32 %v1626_v8, %v845_v7  ;;  %v1017_v7 = vsub.s32 %v1014_v57, %v1476_v13 }
 0x348   : > { %v890_v11 = vadd.f32 %v1626_v8, %v842_v10  ;;  %v955_v51 = vrot.slane %v908_v37, %v954_v26 }
 0x349   : > { %v907_v12 = vmax.f32 %v891_v53, 0.0 }
 0x34a   : > { %v906_v21 = vmax.f32 %v890_v11, 0.0 }
 0x34b   : > { %v851_v18 = vpop.xlane.xlu0 %850  ;;  %v860_v19 = vpop.xlane.xlu1 %859  ;;  %v948_v33 = vrot.slane %v907_v12, %v947_v15  ;;  %v1028_v15 = vadd.s32 4294967192, %v1624_v6 }
 0x34c   : > { %v893_v22 = vadd.f32 %v1626_v8, %v851_v18  ;;  %v943_v34 = vrot.slane %v906_v21, %v942_v20  ;;  %v896_v38 = vadd.f32 %v1626_v8, %v860_v19  ;;  %v1003_v18 = vsub.s32 %v1000_v62, %v1476_v13 }
 0x34e   : > { %v909_v35 = vmax.f32 %v893_v22, 0.0  ;;  %v950_v47 = vsel %vm949_vm1, %v948_v33, %v943_v34  ;;  %v912_v52 = vmax.f32 %v896_v38, 0.0  ;;  %v1038_v38 = vsub.s32 %v1035_v24, %v1476_v13 }
 0x34f   : > { %v863_v30 = vpop.xlane.xlu0 %862  ;;  %v854_v31 = vpop.xlane.xlu1 %853  ;;  %v957_v58 = vsel %vm956_vm2, %v955_v51, %v950_v47 }
 0x350   : > { %v894_v36 = vadd.f32 %v1626_v8, %v854_v31  ;;  %v962_v48 = vrot.slane %v909_v35, %v961_v27  ;;  %v897_v49 = vadd.f32 %v1626_v8, %v863_v30  ;;  %v983_v2 = vrot.slane %v912_v52, %v982_v41 }
 0x351   : > { %v1031_v30 = vsub.s32 %v1028_v15, %v1476_v13  ;;  %v1042_v35 = vadd.s32 4294967176, %v1624_v6 }
 0x352   : > { %v910_v40 = vmax.f32 %v894_v36, 0.0  ;;  %v964_v63 = vsel %vm963_vm3, %v962_v48, %v957_v58  ;;  %v913_v0 = vmax.f32 %v897_v49, 0.0 }
 0x353   : > { %v857_v44 = vpop.xlane.xlu0 %856  ;;  %v872_v46 = vpop.xlane.xlu1 %871  ;;  %v1045_v48 = vsub.s32 %v1042_v35, %v1476_v13 }
 0x354   : > { %v895_v50 = vadd.f32 %v1626_v8, %v857_v44  ;;  %v969_v54 = vrot.slane %v910_v40, %v968_v39  ;;  %v900_v3 = vadd.f32 %v1626_v8, %v872_v46  ;;  %v990_v17 = vrot.slane %v913_v0, %v989_v42 }
 0x356   : > { %v911_v56 = vmax.f32 %v895_v50, 0.0  ;;  %v971_v23 = vsel %vm970_vm4, %v969_v54, %v964_v63  ;;  %v916_v20 = vmax.f32 %v900_v3, 0.0 }
 0x357   : > { %v875_v60 = vpop.xlane.xlu0 %874  ;;  %v866_v61 = vpop.xlane.xlu1 %865 }
 0x358   : > { %v976_v1 = vrot.slane %v911_v56, %v975_v43  ;;  %v898_v16 = vadd.f32 %v1626_v8, %v866_v61  ;;  %v901_v9 = vadd.f32 %v1626_v8, %v875_v60  ;;  %v1011_v36 = vrot.slane %v916_v20, %v1010_v59 }
 0x35a   : > { %v978_v5 = vsel %vm977_vm5, %v976_v1, %v971_v23  ;;  %v914_v10 = vmax.f32 %v898_v16, 0.0  ;;  %v917_v25 = vmax.f32 %v901_v9, 0.0 }
 0x35b   : > { %v985_v53 = vsel %vm984_vm6, %v983_v2, %v978_v5  ;;  %v869_v11 = vpop.xlane.xlu0 %868 }
 0x35c   : > { %v899_v19 = vadd.f32 %v1626_v8, %v869_v11  ;;  %v878_v12 = vpop.xlane.xlu1 %877  ;;  %v997_v21 = vrot.slane %v914_v10, %v996_v4  ;;  %v992_v26 = vsel %vm991_vm7, %v990_v17, %v985_v53  ;;  %v1018_v40 = vrot.slane %v917_v25, %v1017_v7 }
 0x35d   : > { %v902_v22 = vadd.f32 %v1626_v8, %v878_v12 }
 0x35e   : > { %v915_v27 = vmax.f32 %v899_v19, 0.0  ;;  %v999_v37 = vsel %vm998_vm8, %v997_v21, %v992_v26 }
 0x35f   : > { %v918_v29 = vmax.f32 %v902_v22, 0.0  ;;  %v881_v31 = vpop.xlane.xlu0 %880 }
 0x360   : > { %v1004_v32 = vrot.slane %v915_v27, %v1003_v18  ;;  %v903_v33 = vadd.f32 %v1626_v8, %v881_v31  ;;  %v884_v34 = vpop.xlane.xlu1 %883 }
 0x361   : > { %v904_v39 = vadd.f32 %v1626_v8, %v884_v34  ;;  %v1025_v44 = vrot.slane %v918_v29, %v1024_v28 }
 0x362   : > { %v1006_v41 = vsel %vm1005_vm9, %v1004_v32, %v999_v37  ;;  %v919_v42 = vmax.f32 %v903_v33, 0.0 }
 0x363   : > { %v1013_v43 = vsel %vm1012_vm10, %v1011_v36, %v1006_v41  ;;  %v920_v45 = vmax.f32 %v904_v39, 0.0  ;;  %v887_v6 = vpop.xlane.xlu0 %886 }
 0x364   : > { %v1020_v46 = vsel %vm1019_vm11, %v1018_v40, %v1013_v43  ;;  %v1032_v47 = vrot.slane %v919_v42, %v1031_v30  ;;  %v905_v49 = vadd.f32 %v1626_v8, %v887_v6 }
 0x365   : > { %v1027_v50 = vsel %vm1026_vm12, %v1025_v44, %v1020_v46  ;;  %v1039_v51 = vrot.slane %v920_v45, %v1038_v38 }
 0x366   : > { %v1034_v52 = vsel %vm1033_vm13, %v1032_v47, %v1027_v50  ;;  %v921_v54 = vmax.f32 %v905_v49, 0.0 }
 0x367   : > { %v1041_v56 = vsel %vm1040_vm14, %v1039_v51, %v1034_v52 }
 0x368   : > { %v1046_v55 = vrot.slane %v921_v54, %v1045_v48 }
 0x36a   : > { %v1048_v13 = vsel %vm1047_vm15, %v1046_v55, %v1041_v56 }
 0x36b   : > { %1050 = vst [vmem:[%s164_s8] sm:$0x1] %v1048_v13 }
 0x36c   : > { %1327 = shalt.err (!%p1324_p3)
}
 0x36d   : > { %s1328_s27 = scalar_lea.hbm %s1691_s12, 16  ;;  %s1332_s28 = scalar_lea.hbm %s1738_s3, 32 }
 0x36e   : > { %p1329_p4 = scmp.ne.s32.totalorder %s1691_s12, %s1328_s27  ;;  %p1333_p9 = scmp.lt.u32.totalorder %s1691_s12, %s1738_s3 }
 0x36f   : > { %p1334_p10 = scmp.lt.u32.totalorder %s1332_s28, %s1328_s27  ;;  %p1336_p12 = scmp.lt.u32.totalorder %s1328_s27, %s1691_s12 }
 0x370   : > { %p1330_p7 = pnand %p1329_p4, %p1438_p5 }
 0x371   : > { %p1335_p11 = por %p1334_p10, %p1333_p9 }
 0x372   : > { %p1331_p8 = pneg %p1330_p7 }
 0x373   : > { %p1337_p13 = por %p1336_p12, %p1335_p11 }
 0x375   : > { %p1338_p0 = pnand %p1337_p13, %p1331_p8 }
 0x377   : > { %1341 = shalt.err (!%p1338_p0)
}
 0x378   : > { %1260 = dma.vmem_to_hbm [thread:$0]  (%p1438_p5), %s1693_s9, 16, %s1691_s12, %s1052_s13  }
 0x379 PF: > { %p1266_p1 = scmp.ge.s32.totalorder %s1376_s17, 2  ;;  %s1076_s4 = sand.u32 1, %s1364_s14  }
 0x37a   : > { %s1077_s5 = scalar_lea.sflag [#allocation4], %s1076_s4 }
 0x37b   : > { %p1263_p2 = pnand %p1266_p1, %p1442_p6 }
 0x37d   : > { %1359 = dma.done.wait (!%p1263_p2), %s1077_s5, 16  }
 0x37e   : > { %1361 = vsyncadd (!%p1263_p2), %s1077_s5, 4294967280  ;;  %p14_p3 = scmp.ge.s32.totalorder %s1426_s19, 4   ;;  %s1741_s14 = smov %s1368_s15 }
 0x37f   : > { %s1742_s15 = smov %s1372_s16  ;;  %s1743_s16 = smov %s1436_s22 }
 0x380   : > { %s1744_s17 = smov %s1426_s19  ;;  %16 = sbr.rel (!%p14_p3) target bundleno = 5 (0x5), region = 67 }
 0x387   :  { %1081 = vsyncpa [#allocation4], 1 }
 0x388   :  { %1083 = vsyncpa [#allocation4 + $0x1], 1 }

</bundles_post_ra>
